<compile_context>
chip_gen: v7x
topology: tpu7x:2x2x1
jax: 0.10.0
libtpu: 0.0.40
codegen_flags: <defaults>
</compile_context>

<pallas_src>
import functools

import jax
import jax.numpy as jnp
from jax.experimental import pallas as pl
from jax.experimental.pallas import tpu as pltpu

LANE = 128          # TPU lane width
SUBLANE_BF16 = 16   # bf16 packs 16 rows per vreg -> batch tile alignment


def _round_up(x, m):
    return ((x + m - 1) // m) * m


def actor_kernel(x_ref, w1_ref, b1_ref, w2_ref, b2_ref, w3_ref, b3_ref, out_ref):
    # x already bf16 (cast in wrapper). fc1 + ReLU: bf16 MXU operands, f32 accumulate/epilogue.
    h1 = jnp.dot(x_ref[...], w1_ref[...], preferred_element_type=jnp.float32)
    h1 = jnp.maximum(h1 + b1_ref[...], 0.0)
    # fc2 + ReLU
    h2 = jnp.dot(h1.astype(jnp.bfloat16), w2_ref[...], preferred_element_type=jnp.float32)
    h2 = jnp.maximum(h2 + b2_ref[...], 0.0)
    # out + tanh (output lanes padded to 128; pad columns of w3/b3 are zero -> tanh(0)=0)
    o = jnp.dot(h2.astype(jnp.bfloat16), w3_ref[...], preferred_element_type=jnp.float32)
    out_ref[...] = jnp.tanh(o + b3_ref[...]).astype(out_ref.dtype)


def prepare_kernel_params(params_f32):
    """Cast weights to bf16 and pad the output layer to a lane-dense (multiple of 128) width."""
    w1, b1, w2, b2, w3, b3 = params_f32
    a = w3.shape[1]
    a_pad = _round_up(a, LANE)
    w3p = jnp.pad(w3, ((0, 0), (0, a_pad - a)))
    b3p = jnp.pad(b3, ((0, 0), (0, a_pad - a)))
    kernel_params = (w1.astype(jnp.bfloat16), b1.astype(jnp.float32),
                     w2.astype(jnp.bfloat16), b2.astype(jnp.float32),
                     w3p.astype(jnp.bfloat16), b3p.astype(jnp.float32))
    return kernel_params, a


@functools.partial(jax.jit, static_argnames=("action_size", "batch_tile"))
def actor_forward(x, kernel_params, action_size, batch_tile=1024):
    w1, b1, w2, b2, w3, b3 = kernel_params
    B, S = x.shape
    A_pad = w3.shape[1]

    # Batch tile: multiple of 16 (bf16 sublane packing), capped at batch_tile, and chosen
    # so the grid has >=2 steps whenever B >= 32 rows (keeps both v7x TensorCores busy).
    B16 = _round_up(B, SUBLANE_BF16)
    tb = min(batch_tile, max(SUBLANE_BF16, _round_up(pl.cdiv(B16, 2), SUBLANE_BF16)))
    B_pad = _round_up(B16, tb)

    # Cast x to bf16 in the wrapper (MXU consumes bf16 anyway) -> halves the x DMA.
    x = x.astype(jnp.bfloat16)
    if B_pad != B:
        x = jnp.pad(x, ((0, B_pad - B), (0, 0)))

    grid = (B_pad // tb,)

    def resident(arr):
        # Same block index every grid step -> fetched once, stays VMEM-resident.
        return pl.BlockSpec(arr.shape, lambda i: (0, 0))

    flops = 2 * B_pad * (S * 512 + 512 * 256 + 256 * A_pad)
    bytes_accessed = (
        B_pad * S * 2                                                 # x (bf16)
        + sum(int(a.size) * a.dtype.itemsize for a in kernel_params)  # weights/biases
        + B_pad * A_pad * 2                                           # out (bf16)
    )

    out = pl.pallas_call(
        actor_kernel,
        out_shape=jax.ShapeDtypeStruct((B_pad, A_pad), jnp.bfloat16),
        grid=grid,
        in_specs=[pl.BlockSpec((tb, S), lambda i: (i, 0)),
                  resident(w1), resident(b1),
                  resident(w2), resident(b2),
                  resident(w3), resident(b3)],
        out_specs=pl.BlockSpec((tb, A_pad), lambda i: (i, 0)),
        compiler_params=pltpu.CompilerParams(dimension_semantics=("parallel",)),
        cost_estimate=pl.CostEstimate(flops=flops,
                                      transcendentals=B_pad * A_pad,
                                      bytes_accessed=bytes_accessed),
    )(x, w1, b1, w2, b2, w3, b3)

    # Slice off batch/lane padding; hand back f32 to the caller.
    return out[:B, :action_size].astype(jnp.float32)


def init_actor_params(key, state_size, action_size):
    """Deterministic f32 init mirroring the PyTorch Actor:
       fc1/fc2 weights ~ U(-1/sqrt(fan_in), 1/sqrt(fan_in)), out weights ~ U(-3e-3, 3e-3),
       biases keep the PyTorch nn.Linear default U(-1/sqrt(fan_in), 1/sqrt(fan_in))
       (the reference module only resets weights)."""
    k1, k2, k3, kb1, kb2, kb3 = jax.random.split(key, 6)

    def lim(fan_in):
        return 1.0 / jnp.sqrt(jnp.float32(fan_in))

    w1 = jax.random.uniform(k1, (state_size, 512), jnp.float32,
                            -lim(state_size), lim(state_size))
    b1 = jax.random.uniform(kb1, (1, 512), jnp.float32,
                            -lim(state_size), lim(state_size))
    w2 = jax.random.uniform(k2, (512, 256), jnp.float32, -lim(512), lim(512))
    b2 = jax.random.uniform(kb2, (1, 256), jnp.float32, -lim(512), lim(512))
    w3 = jax.random.uniform(k3, (256, action_size), jnp.float32, -0.003, 0.003)
    b3 = jax.random.uniform(kb3, (1, action_size), jnp.float32, -lim(256), lim(256))
    return (w1, b1, w2, b2, w3, b3)


def actor_reference(x, params_f32):
    w1, b1, w2, b2, w3, b3 = params_f32
    h1 = jnp.maximum(x @ w1 + b1, 0.0)
    h2 = jnp.maximum(h1 @ w2 + b2, 0.0)
    return jnp.tanh(h2 @ w3 + b3)


if __name__ == "__main__":
    key = jax.random.PRNGKey(0)
    state_size, action_size, batch = 32, 8, 8

    kx, kp = jax.random.split(key)
    x = jax.random.normal(kx, (batch, state_size), jnp.float32)
    params_f32 = init_actor_params(kp, state_size, action_size)
    kernel_params, a = prepare_kernel_params(params_f32)

    out = actor_forward(x, kernel_params, action_size=a)
    out = jax.block_until_ready(out)

    ref = actor_reference(x, params_f32)
    assert out.shape == (batch, action_size)
    assert out.dtype == jnp.float32
    # bf16 MXU operands / bf16 output vs f32 reference -> allow ~1e-2-level deviation.
    assert jnp.allclose(out, ref, atol=2e-2, rtol=2e-2), (
        float(jnp.max(jnp.abs(out - ref))))

    print("KERNEL_OK")
</pallas_src>

<mosaic_0001>
module attributes {stable_mosaic.version = 11 : i64} {
  func.func @actor_kernel(%arg0: i32, %arg1: memref<16x32xbf16, #tpu.memory_space<vmem>>, %arg2: memref<32x512xbf16, #tpu.memory_space<vmem>>, %arg3: memref<1x512xf32, #tpu.memory_space<vmem>>, %arg4: memref<512x256xbf16, #tpu.memory_space<vmem>>, %arg5: memref<1x256xf32, #tpu.memory_space<vmem>>, %arg6: memref<256x128xbf16, #tpu.memory_space<vmem>>, %arg7: memref<1x128xf32, #tpu.memory_space<vmem>>, %arg8: memref<16x128xbf16, #tpu.memory_space<vmem>>) attributes {dimension_semantics = [#tpu.dimension_semantics<parallel>], iteration_bounds = array<i64: 1>, scalar_prefetch = 0 : i64, scratch_operands = 0 : i64, tpu.core_type = #tpu.core_type<tc>, window_params = [{transform_indices = @transform_0, window_bounds = array<i64: 16, 32>}, {pipeline_mode = #tpu.pipeline_mode<synchronous>, transform_indices = @transform_1, window_bounds = array<i64: 32, 512>}, {pipeline_mode = #tpu.pipeline_mode<synchronous>, transform_indices = @transform_2, window_bounds = array<i64: 1, 512>}, {pipeline_mode = #tpu.pipeline_mode<synchronous>, transform_indices = @transform_3, window_bounds = array<i64: 512, 256>}, {pipeline_mode = #tpu.pipeline_mode<synchronous>, transform_indices = @transform_4, window_bounds = array<i64: 1, 256>}, {pipeline_mode = #tpu.pipeline_mode<synchronous>, transform_indices = @transform_5, window_bounds = array<i64: 256, 128>}, {pipeline_mode = #tpu.pipeline_mode<synchronous>, transform_indices = @transform_6, window_bounds = array<i64: 1, 128>}, {transform_indices = @transform_7, window_bounds = array<i64: 16, 128>}]} {
    %c0 = arith.constant 0 : index
    %c0_0 = arith.constant 0 : index
    %0 = vector.load %arg1[%c0, %c0_0] : memref<16x32xbf16, #tpu.memory_space<vmem>>, vector<16x32xbf16>
    %c0_1 = arith.constant 0 : index
    %c0_2 = arith.constant 0 : index
    %1 = vector.load %arg2[%c0_1, %c0_2] : memref<32x512xbf16, #tpu.memory_space<vmem>>, vector<32x512xbf16>
    %cst = arith.constant dense<0.000000e+00> : vector<16x512xf32>
    %2 = tpu.matmul %0, %1, %cst {dimension_numbers = #tpu.dot_dimension_numbers<[1], [0], [0], [1], [0, 0, 1, 1], [], []>} : vector<16x32xbf16>, vector<32x512xbf16>, vector<16x512xf32> -> vector<16x512xf32>
    %c0_3 = arith.constant 0 : index
    %c0_4 = arith.constant 0 : index
    %3 = vector.load %arg3[%c0_3, %c0_4] : memref<1x512xf32, #tpu.memory_space<vmem>>, vector<1x512xf32>
    %4 = vector.broadcast %3 : vector<1x512xf32> to vector<16x512xf32>
    %5 = arith.addf %2, %4 : vector<16x512xf32>
    %cst_5 = arith.constant 0.000000e+00 : f32
    %6 = vector.broadcast %cst_5 : f32 to vector<16x512xf32>
    %7 = arith.maximumf %5, %6 : vector<16x512xf32>
    %8 = arith.truncf %7 : vector<16x512xf32> to vector<16x512xbf16>
    %c0_6 = arith.constant 0 : index
    %c0_7 = arith.constant 0 : index
    %9 = vector.load %arg4[%c0_6, %c0_7] : memref<512x256xbf16, #tpu.memory_space<vmem>>, vector<512x256xbf16>
    %cst_8 = arith.constant dense<0.000000e+00> : vector<16x256xf32>
    %10 = tpu.matmul %8, %9, %cst_8 {dimension_numbers = #tpu.dot_dimension_numbers<[1], [0], [0], [1], [0, 0, 1, 1], [], []>} : vector<16x512xbf16>, vector<512x256xbf16>, vector<16x256xf32> -> vector<16x256xf32>
    %c0_9 = arith.constant 0 : index
    %c0_10 = arith.constant 0 : index
    %11 = vector.load %arg5[%c0_9, %c0_10] : memref<1x256xf32, #tpu.memory_space<vmem>>, vector<1x256xf32>
    %12 = vector.broadcast %11 : vector<1x256xf32> to vector<16x256xf32>
    %13 = arith.addf %10, %12 : vector<16x256xf32>
    %cst_11 = arith.constant 0.000000e+00 : f32
    %14 = vector.broadcast %cst_11 : f32 to vector<16x256xf32>
    %15 = arith.maximumf %13, %14 : vector<16x256xf32>
    %16 = arith.truncf %15 : vector<16x256xf32> to vector<16x256xbf16>
    %c0_12 = arith.constant 0 : index
    %c0_13 = arith.constant 0 : index
    %17 = vector.load %arg6[%c0_12, %c0_13] : memref<256x128xbf16, #tpu.memory_space<vmem>>, vector<256x128xbf16>
    %cst_14 = arith.constant dense<0.000000e+00> : vector<16x128xf32>
    %18 = tpu.matmul %16, %17, %cst_14 {dimension_numbers = #tpu.dot_dimension_numbers<[1], [0], [0], [1], [0, 0, 1, 1], [], []>} : vector<16x256xbf16>, vector<256x128xbf16>, vector<16x128xf32> -> vector<16x128xf32>
    %c0_15 = arith.constant 0 : index
    %c0_16 = arith.constant 0 : index
    %19 = vector.load %arg7[%c0_15, %c0_16] : memref<1x128xf32, #tpu.memory_space<vmem>>, vector<1x128xf32>
    %20 = vector.broadcast %19 : vector<1x128xf32> to vector<16x128xf32>
    %21 = arith.addf %18, %20 : vector<16x128xf32>
    %22 = math.tanh %21 : vector<16x128xf32>
    %23 = arith.truncf %22 : vector<16x128xf32> to vector<16x128xbf16>
    %c0_17 = arith.constant 0 : index
    %c0_18 = arith.constant 0 : index
    %24 = vector.load %arg8[%c0_17, %c0_18] : memref<16x128xbf16, #tpu.memory_space<vmem>>, vector<16x128xbf16>
    tpu.vector_store %arg8[%c0_17, %c0_18], %23 {strides = array<i32>} : memref<16x128xbf16, #tpu.memory_space<vmem>>, vector<16x128xbf16>,
    return
  }
  func.func @transform_0(%arg0: i32) -> (i32, i32) {
    %c0_i32 = arith.constant 0 : i32
    %c0_i32_0 = arith.constant 0 : i32
    return %arg0, %c0_i32 : i32, i32
  }
  func.func @transform_1(%arg0: i32) -> (i32, i32) {
    %c0_i32 = arith.constant 0 : i32
    %c0_i32_0 = arith.constant 0 : i32
    %c0_i32_1 = arith.constant 0 : i32
    return %c0_i32, %c0_i32_0 : i32, i32
  }
  func.func @transform_2(%arg0: i32) -> (i32, i32) {
    %c0_i32 = arith.constant 0 : i32
    %c0_i32_0 = arith.constant 0 : i32
    %c0_i32_1 = arith.constant 0 : i32
    return %c0_i32, %c0_i32_0 : i32, i32
  }
  func.func @transform_3(%arg0: i32) -> (i32, i32) {
    %c0_i32 = arith.constant 0 : i32
    %c0_i32_0 = arith.constant 0 : i32
    %c0_i32_1 = arith.constant 0 : i32
    return %c0_i32, %c0_i32_0 : i32, i32
  }
  func.func @transform_4(%arg0: i32) -> (i32, i32) {
    %c0_i32 = arith.constant 0 : i32
    %c0_i32_0 = arith.constant 0 : i32
    %c0_i32_1 = arith.constant 0 : i32
    return %c0_i32, %c0_i32_0 : i32, i32
  }
  func.func @transform_5(%arg0: i32) -> (i32, i32) {
    %c0_i32 = arith.constant 0 : i32
    %c0_i32_0 = arith.constant 0 : i32
    %c0_i32_1 = arith.constant 0 : i32
    return %c0_i32, %c0_i32_0 : i32, i32
  }
  func.func @transform_6(%arg0: i32) -> (i32, i32) {
    %c0_i32 = arith.constant 0 : i32
    %c0_i32_0 = arith.constant 0 : i32
    %c0_i32_1 = arith.constant 0 : i32
    return %c0_i32, %c0_i32_0 : i32, i32
  }
  func.func @transform_7(%arg0: i32) -> (i32, i32) {
    %c0_i32 = arith.constant 0 : i32
    %c0_i32_0 = arith.constant 0 : i32
    return %arg0, %c0_i32 : i32, i32
  }
}

</mosaic_0001>

<bundles_post_ra>
// kernel: actor_forward.1
= control target key start
LH: loop header
LB: loop body
LE: loop exit
PB: predicated region body
PF: predicated region fallthrough
CT: control target
= control target key end

     0   :  { %12 = vsyncpa [#allocation3], 0  ;;  %s1386_s0 = inlined_call_operand.vmem [shape: bf16[16,32], index: 0, kind: input, shape index: {}]   ;;  %s1387_s1 = inlined_call_operand.hbm [shape: bf16[32,512], index: 1, kind: input, shape index: {}]   ;;  %s1388_s2 = inlined_call_operand.vmem [shape: f32[1,512], index: 2, kind: input, shape index: {}]   ;;  %s1389_s3 = inlined_call_operand.hbm [shape: bf16[512,256], index: 3, kind: input, shape index: {}]   ;;  %s1390_s4 = inlined_call_operand.vmem [shape: f32[1,256], index: 4, kind: input, shape index: {}]   ;;  %s1391_s5 = inlined_call_operand.hbm [shape: bf16[256,128], index: 5, kind: input, shape index: {}]   ;;  %s1392_s6 = inlined_call_operand.vmem [shape: f32[1,128], index: 6, kind: input, shape index: {}]   ;;  %s1393_s7 = inlined_call_operand.vmem [shape: bf16[16,128], index: 7, kind: output, shape index: {}]  }
   0x1   :  { %13 = vsyncpa [#allocation5], 0  ;;  %s1269_s24 = smov [#allocation4]   ;;  %s1199_s28 = scalar_lea.hbm %s1389_s3, 8192 }
   0x2   :  { %s35_s25 = sshll.u32 %s1269_s24, 4  ;;  %p1200_p0 = scmp.ne.s32.totalorder %s1389_s3, %s1199_s28  ;;  %s36_s25 = int_to_ptr.vmem [resolvable:$true] %s35_s25 }
   0x3   :  { %p1203_p1 = scmp.lt.u32.totalorder %s1199_s28, %s1389_s3 }
   0x5   :  { %p1205_p2 = pnand %p1203_p1, %p1200_p0 }
   0x7   :  { %1208 = shalt.err (!%p1205_p2)
}
   0x8   :  { %s1209_s10 = scalar_lea.vmem %s36_s25, 8192  ;;  %p1214_p4 = scmp.lt.s32.totalorder %s36_s25, %s36_s25 }
   0x9   :  { %p1210_p3 = scmp.ne.s32.totalorder %s36_s25, %s1209_s10  ;;  %p1215_p5 = scmp.lt.s32.totalorder %s1209_s10, %s1209_s10 }
   0xb   :  { %p1216_p6 = por %p1215_p5, %p1214_p4 }
   0xd   :  { %p1217_p7 = pnand %p1216_p6, %p1210_p3 }
   0xf   :  { %1220 = shalt.err (!%p1217_p7)
}
  0x10   :  { %s1270_s11 = smov 128   ;;  %s1271_s12 = smov 8  }
  0x11   :  { %41 = dma.hbm_to_vmem [thread:$0]  %s1389_s3, 8192, %s36_s25, [#allocation5], %s1270_s11, %s1270_s11, %s1271_s12  }
  0x12   :  { %s1272_s15 = smov [#allocation2]   ;;  %s1221_s19 = scalar_lea.hbm %s1387_s1, 1024 }
  0x13   :  { %s21_s16 = sshll.u32 %s1272_s15, 4  ;;  %p1222_p8 = scmp.ne.s32.totalorder %s1387_s1, %s1221_s19  ;;  %s22_s16 = int_to_ptr.vmem [resolvable:$true] %s21_s16 }
  0x14   :  { %p1225_p9 = scmp.lt.u32.totalorder %s1221_s19, %s1387_s1 }
  0x16   :  { %p1227_p10 = pnand %p1225_p9, %p1222_p8 }
  0x18   :  { %1230 = shalt.err (!%p1227_p10)
}
  0x19   :  { %s1231_s24 = scalar_lea.vmem %s22_s16, 1024  ;;  %p1236_p12 = scmp.lt.s32.totalorder %s22_s16, %s22_s16 }
  0x1a   :  { %p1232_p11 = scmp.ne.s32.totalorder %s22_s16, %s1231_s24  ;;  %p1237_p13 = scmp.lt.s32.totalorder %s1231_s24, %s1231_s24 }
  0x1c   :  { %p1238_p0 = por %p1237_p13, %p1236_p12 }
  0x1e   :  { %p1239_p1 = pnand %p1238_p0, %p1232_p11 }
  0x20   :  { %1242 = shalt.err (!%p1239_p1)
}
  0x21   :  { %s1273_s3 = smov 256   ;;  %s1274_s25 = smov 16  }
  0x22   :  { %27 = dma.hbm_to_vmem [thread:$0]  %s1387_s1, 1024, %s22_s16, [#allocation3], %s1273_s3, %s1273_s3, %s1274_s25  }
  0x23   :  { %s1275_s28 = smov [#allocation6]   ;;  %s1243_s9 = scalar_lea.hbm %s1391_s5, 2048 }
  0x24   :  { %s49_s29 = sshll.u32 %s1275_s28, 4  ;;  %p1244_p2 = scmp.ne.s32.totalorder %s1391_s5, %s1243_s9  ;;  %s50_s29 = int_to_ptr.vmem [resolvable:$true] %s49_s29 }
  0x25   :  { %p1247_p3 = scmp.lt.u32.totalorder %s1243_s9, %s1391_s5 }
  0x27   :  { %p1249_p4 = pnand %p1247_p3, %p1244_p2 }
  0x29   :  { %1252 = shalt.err (!%p1249_p4)
}
  0x2a   :  { %s1253_s14 = scalar_lea.vmem %s50_s29, 2048  ;;  %p1258_p6 = scmp.lt.s32.totalorder %s50_s29, %s50_s29 }
  0x2b   :  { %p1254_p5 = scmp.ne.s32.totalorder %s50_s29, %s1253_s14  ;;  %p1259_p7 = scmp.lt.s32.totalorder %s1253_s14, %s1253_s14 }
  0x2d   :  { %p1260_p8 = por %p1259_p7, %p1258_p6 }
  0x2f   :  { %p1261_p9 = pnand %p1260_p8, %p1254_p5 }
  0x31   :  { %1264 = shalt.err (!%p1261_p9)
}
  0x32   :  { %s1276_s1 = smov 64   ;;  %s1277_s15 = smov 4  }
  0x33   :  { %55 = dma.hbm_to_vmem [thread:$0]  %s1391_s5, 2048, %s50_s29, [#allocation5], %s1276_s1, %s1276_s1, %s1277_s15  }
  0x34   :  { %1265 = dma.done.wait [#allocation3], 1024  }
  0x35   :  { %1266 = vsyncadd [#allocation3], 4294966272 }
  0x36   :  { %1267 = dma.done.wait [#allocation5], 10240  }
  0x37   :  { %1268 = vsyncadd [#allocation5], 4294957056  ;;  %v1278_v0 = vmov 0   ;;  %v1070_v1 = vld [vmem:[#allocation2 + $0x4] ss:$16 sps:$4 sm:$0xff]   ;;  %vm145_vm0 = vcmask 261120  }
  0x38   :  { %181 = vmatprep.mubr.bf16.mxu0 %v1278_v0  ;;  %v1072_v2 = vld [vmem:[#allocation2] ss:$16 sps:$4 sm:$0xff]   ;;  %149 = vmatprep.subr.bf16.mxu0 %v1070_v1  ;;  %v1073_v3 = vld [vmem:[#allocation2 + $0x24] ss:$16 sps:$4 sm:$0xff]   ;;  %v1079_v5 = vld [vmem:[#allocation2 + $0xc] ss:$16 sps:$4 sm:$0xff]  }
  0x39   :  { %150 = vmatpush1.bf16.msra.mxu0 %v1072_v2  ;;  %v1075_v4 = vld [vmem:[#allocation2 + $0x20] ss:$16 sps:$4 sm:$0xff]   ;;  %v1077_v7 = vld [vmem:[#allocation2 + $0x8] ss:$16 sps:$4 sm:$0xff]   ;;  %v1083_v8 = vld [vmem:[#allocation4 + $0x4] ss:$8 sps:$4 sm:$0xff]  }
  0x3a   :  { %151 = vmatprep.subr.bf16.mxu0 %v1073_v3  ;;  %v1076_v6 = vld [vmem:[%s1386_s0] sm:$0xff]   ;;  %v1082_v10 = vld [vmem:[#allocation2 + $0x2c] ss:$16 sps:$4 sm:$0xff]   ;;  %643 = vmatprep.subr.bf16.mxu1 %v1083_v8  ;;  %v1088_v12 = vld [vmem:[#allocation4 + $0x10] ss:$8 sps:$4 sm:$0xff]  }
  0x3b   :  { %v1085_v9 = vld [vmem:[#allocation4] ss:$8 sps:$4 sm:$0xff]   ;;  %v1086_v11 = vld [vmem:[#allocation4 + $0x14] ss:$8 sps:$4 sm:$0xff]   ;;  %v1089_v14 = vld [vmem:[#allocation4 + $0x24] ss:$8 sps:$4 sm:$0xff]  }
  0x3c   :  { %644 = vmatpush1.bf16.msra.mxu1 %v1085_v9  ;;  %v1080_v13 = vld [vmem:[#allocation2 + $0x28] ss:$16 sps:$4 sm:$0xff]   ;;  %v1093_v15 = vld [vmem:[#allocation4 + $0x104] ss:$8 sps:$4 sm:$0xff]   ;;  %v1095_v18 = vld [vmem:[#allocation4 + $0x34] ss:$8 sps:$4 sm:$0xff]  }
  0x3d   :  { %152 = vmatpush1.bf16.msra.mxu0 %v1075_v4  ;;  %645 = vmatprep.subr.bf16.mxu1 %v1086_v11  ;;  %v1091_v16 = vld [vmem:[#allocation4 + $0x100] ss:$8 sps:$4 sm:$0xff]   ;;  %v1099_v19 = vld [vmem:[#allocation4 + $0x114] ss:$8 sps:$4 sm:$0xff]   ;;  %v1100_v20 = vld [vmem:[#allocation4 + $0x30] ss:$8 sps:$4 sm:$0xff]   ;;  %v80_v11 = vlaneseq }
  0x3e   :  { %192 = vmatprep.subr.bf16.mxu0 %v1079_v5  ;;  %v1094_v17 = vld [vmem:[#allocation4 + $0x20] ss:$8 sps:$4 sm:$0xff]   ;;  %v1097_v21 = vld [vmem:[#allocation4 + $0x110] ss:$8 sps:$4 sm:$0xff]   ;;  %v1101_v22 = vld [vmem:[#allocation4 + $0x44] ss:$8 sps:$4 sm:$0xff]  }
  0x3f   :  { %v1105_v23 = vld [vmem:[#allocation4 + $0x124] ss:$8 sps:$4 sm:$0xff]   ;;  %v1103_v24 = vld [vmem:[#allocation4 + $0x120] ss:$8 sps:$4 sm:$0xff]   ;;  %v1107_v26 = vld [vmem:[#allocation4 + $0x54] ss:$8 sps:$4 sm:$0xff]  }
  0x40   :  { %938 = vmatmul.mubr.msk.bf16.vlgmr.msra.gmra.mrb[0].mxu0 %vm145_vm0, %v1076_v6  ;;  %646 = vmatpush1.bf16.msra.mxu1 %v1088_v12  ;;  %v1106_v25 = vld [vmem:[#allocation4 + $0x40] ss:$8 sps:$4 sm:$0xff]   ;;  %v1111_v27 = vld [vmem:[#allocation4 + $0x134] ss:$8 sps:$4 sm:$0xff]   ;;  %v1112_v28 = vld [vmem:[#allocation4 + $0x50] ss:$8 sps:$4 sm:$0xff]  }
  0x41   :  { %193 = vmatpush1.bf16.msra.mxu0 %v1077_v7  ;;  %224 = vmatprep.mubr.bf16.mxu0 %v1278_v0  ;;  %v1109_v29 = vld [vmem:[#allocation4 + $0x130] ss:$8 sps:$4 sm:$0xff]   ;;  %v1113_v30 = vld [vmem:[#allocation4 + $0x64] ss:$8 sps:$4 sm:$0xff]   ;;  %v1115_v32 = vld [vmem:[#allocation4 + $0x140] ss:$8 sps:$4 sm:$0xff]  }
  0x42   :  { %194 = vmatprep.subr.bf16.mxu0 %v1082_v10  ;;  %647 = vmatprep.subr.bf16.mxu1 %v1089_v14  ;;  %v1117_v31 = vld [vmem:[#allocation4 + $0x144] ss:$8 sps:$4 sm:$0xff]   ;;  %v1118_v33 = vld [vmem:[#allocation4 + $0x60] ss:$8 sps:$4 sm:$0xff]   ;;  %v1119_v34 = vld [vmem:[#allocation4 + $0x74] ss:$8 sps:$4 sm:$0xff]  }
  0x43   :  { %v1123_v35 = vld [vmem:[#allocation4 + $0x154] ss:$8 sps:$4 sm:$0xff]   ;;  %v1124_v36 = vld [vmem:[#allocation4 + $0x70] ss:$8 sps:$4 sm:$0xff]   ;;  %v1125_v38 = vld [vmem:[#allocation4 + $0x84] ss:$8 sps:$4 sm:$0xff]  }
  0x44   :  { %648 = vmatpush1.bf16.msra.mxu1 %v1094_v17  ;;  %v1121_v37 = vld [vmem:[#allocation4 + $0x150] ss:$8 sps:$4 sm:$0xff]   ;;  %v1129_v39 = vld [vmem:[#allocation4 + $0x164] ss:$8 sps:$4 sm:$0xff]   ;;  %v1127_v40 = vld [vmem:[#allocation4 + $0x160] ss:$8 sps:$4 sm:$0xff]  }
  0x45   :  { %195 = vmatpush1.bf16.msra.mxu0 %v1080_v13  ;;  %649 = vmatprep.subr.bf16.mxu1 %v1095_v18  ;;  %v1130_v41 = vld [vmem:[#allocation4 + $0x80] ss:$8 sps:$4 sm:$0xff]   ;;  %v1131_v42 = vld [vmem:[#allocation4 + $0x94] ss:$8 sps:$4 sm:$0xff]   ;;  %v1136_v44 = vld [vmem:[#allocation4 + $0x90] ss:$8 sps:$4 sm:$0xff]  }
  0x46   :  { %686 = vmatprep.subr.bf16.mxu0 %v1093_v15  ;;  %v1135_v43 = vld [vmem:[#allocation4 + $0x174] ss:$8 sps:$4 sm:$0xff]   ;;  %v1133_v45 = vld [vmem:[#allocation4 + $0x170] ss:$8 sps:$4 sm:$0xff]   ;;  %v1137_v46 = vld [vmem:[#allocation4 + $0xa4] ss:$8 sps:$4 sm:$0xff]  }
  0x47   :  { %v1141_v47 = vld [vmem:[#allocation4 + $0x184] ss:$8 sps:$4 sm:$0xff]   ;;  %v1142_v48 = vld [vmem:[#allocation4 + $0xa0] ss:$8 sps:$4 sm:$0xff]   ;;  %v1143_v50 = vld [vmem:[#allocation4 + $0xb4] ss:$8 sps:$4 sm:$0xff]  }
  0x48   :  { %939 = vmatmul.mubr.msk.bf16.vlgmr.msra.gmra.mrb[4].mxu0 %vm145_vm0, %v1076_v6  ;;  %650 = vmatpush1.bf16.msra.mxu1 %v1100_v20  ;;  %v1139_v49 = vld [vmem:[#allocation4 + $0x180] ss:$8 sps:$4 sm:$0xff]   ;;  %v1147_v51 = vld [vmem:[#allocation4 + $0x194] ss:$8 sps:$4 sm:$0xff]   ;;  %v1148_v52 = vld [vmem:[#allocation4 + $0xb0] ss:$8 sps:$4 sm:$0xff]  }
  0x49   :  { %687 = vmatpush1.bf16.msra.mxu0 %v1091_v16  ;;  %651 = vmatprep.subr.bf16.mxu1 %v1101_v22  ;;  %v1145_v53 = vld [vmem:[#allocation4 + $0x190] ss:$8 sps:$4 sm:$0xff]   ;;  %v1149_v54 = vld [vmem:[#allocation4 + $0xc4] ss:$8 sps:$4 sm:$0xff]   ;;  %v1154_v56 = vld [vmem:[#allocation4 + $0xc0] ss:$8 sps:$4 sm:$0xff]  }
  0x4a   :  { %688 = vmatprep.subr.bf16.mxu0 %v1099_v19  ;;  %v1153_v55 = vld [vmem:[#allocation4 + $0x1a4] ss:$8 sps:$4 sm:$0xff]   ;;  %v1151_v57 = vld [vmem:[#allocation4 + $0x1a0] ss:$8 sps:$4 sm:$0xff]   ;;  %v1155_v58 = vld [vmem:[#allocation4 + $0xd4] ss:$8 sps:$4 sm:$0xff]  }
  0x4b   :  { %v1159_v59 = vld [vmem:[#allocation4 + $0x1b4] ss:$8 sps:$4 sm:$0xff]   ;;  %v1157_v60 = vld [vmem:[#allocation4 + $0x1b0] ss:$8 sps:$4 sm:$0xff]   ;;  %v1161_v62 = vld [vmem:[#allocation4 + $0xe4] ss:$8 sps:$4 sm:$0xff]  }
  0x4c   :  { %652 = vmatpush1.bf16.msra.mxu1 %v1106_v25  ;;  %v1160_v61 = vld [vmem:[#allocation4 + $0xd0] ss:$8 sps:$4 sm:$0xff]   ;;  %v1165_v63 = vld [vmem:[#allocation4 + $0x1c4] ss:$8 sps:$4 sm:$0xff]   ;;  %v1163_v0 = vld [vmem:[#allocation4 + $0x1c0] ss:$8 sps:$4 sm:$0xff]  }
  0x4d   :  { %689 = vmatpush1.bf16.msra.mxu0 %v1097_v21  ;;  %653 = vmatprep.subr.bf16.mxu1 %v1107_v26  ;;  %v1166_v1 = vld [vmem:[#allocation4 + $0xe0] ss:$8 sps:$4 sm:$0xff]   ;;  %v1167_v2 = vld [vmem:[#allocation4 + $0xf4] ss:$8 sps:$4 sm:$0xff]   ;;  %v1169_v4 = vld [vmem:[#allocation4 + $0x1d0] ss:$8 sps:$4 sm:$0xff]  }
  0x4e   :  { %690 = vmatprep.subr.bf16.mxu0 %v1105_v23  ;;  %v1171_v3 = vld [vmem:[#allocation4 + $0x1d4] ss:$8 sps:$4 sm:$0xff]   ;;  %v1172_v5 = vld [vmem:[#allocation4 + $0xf0] ss:$8 sps:$4 sm:$0xff]   ;;  %v1175_v6 = vld [vmem:[#allocation4 + $0x1e4] ss:$8 sps:$4 sm:$0xff]  }
  0x4f   :  { %v1173_v7 = vld [vmem:[#allocation4 + $0x1e0] ss:$8 sps:$4 sm:$0xff]   ;;  %v1178_v8 = vld [vmem:[#allocation4 + $0x1f4] ss:$8 sps:$4 sm:$0xff]   ;;  %v1176_v9 = vld [vmem:[#allocation4 + $0x1f0] ss:$8 sps:$4 sm:$0xff]  }
  0x50   :  { %654 = vmatpush1.bf16.msra.mxu1 %v1112_v28  ;;  %v1179_v10 = vld [vmem:[#allocation6 + $0x40] sm:$0xff]   ;;  %v1360_v12 = vshrl.u32 %v80_v11, 7 }
  0x51   :  { %691 = vmatpush1.bf16.msra.mxu0 %v1103_v24  ;;  %655 = vmatprep.subr.bf16.mxu1 %v1113_v30  ;;  %v78_v14 = vld [vmem:[%s1388_s2] sm:$0xf] }
  0x52   :  { %692 = vmatprep.subr.bf16.mxu0 %v1111_v27  ;;  %v82_v13 = vsub.s32 0, %v1360_v12  ;;  %v86_v15 = vsub.s32 1, %v1360_v12  ;;  %v90_v21 = vsub.s32 2, %v1360_v12  ;;  %v94_v24 = vsub.s32 3, %v1360_v12 }
  0x54   :  { %656 = vmatpush1.bf16.msra.mxu1 %v1118_v33  ;;  %v83_v16 = vrot.slane %v78_v14, %v82_v13  ;;  %v87_v17 = vrot.slane %v78_v14, %v86_v15  ;;  %v91_v30 = vrot.slane %v78_v14, %v90_v21  ;;  %v95_v33 = vrot.slane %v78_v14, %v94_v24 }
  0x55   :  { %693 = vmatpush1.bf16.msra.mxu0 %v1109_v29  ;;  %657 = vmatprep.subr.bf16.mxu1 %v1119_v34 }
  0x56   :  { %694 = vmatprep.subr.bf16.mxu0 %v1117_v31 }
  0x58   :  { %658 = vmatpush1.bf16.msra.mxu1 %v1124_v36 }
  0x59   :  { %695 = vmatpush1.bf16.msra.mxu0 %v1115_v32  ;;  %659 = vmatprep.subr.bf16.mxu1 %v1125_v38 }
  0x5a   :  { %696 = vmatprep.subr.bf16.mxu0 %v1123_v35 }
  0x5c   :  { %660 = vmatpush1.bf16.msra.mxu1 %v1130_v41 }
  0x5d   :  { %697 = vmatpush1.bf16.msra.mxu0 %v1121_v37  ;;  %661 = vmatprep.subr.bf16.mxu1 %v1131_v42  ;;  %v1180_v37 = vld [vmem:[#allocation6] sm:$0xff]  }
  0x5e   :  { %698 = vmatprep.subr.bf16.mxu0 %v1129_v39 }
  0x60   :  { %662 = vmatpush1.bf16.msra.mxu1 %v1136_v44 }
  0x61   :  { %699 = vmatpush1.bf16.msra.mxu0 %v1127_v40  ;;  %663 = vmatprep.subr.bf16.mxu1 %v1137_v46  ;;  %v1181_v40 = vld [vmem:[#allocation6 + $0x48] sm:$0xff]  }
  0x62   :  { %700 = vmatprep.subr.bf16.mxu0 %v1135_v43  ;;  %v1182_v46 = vld [vmem:[#allocation6 + $0x8] sm:$0xff]  }
  0x64   :  { %664 = vmatpush1.bf16.msra.mxu1 %v1142_v48 }
  0x65   :  { %701 = vmatpush1.bf16.msra.mxu0 %v1133_v45  ;;  %665 = vmatprep.subr.bf16.mxu1 %v1143_v50 }
  0x66   :  { %702 = vmatprep.subr.bf16.mxu0 %v1141_v47 }
  0x68   :  { %666 = vmatpush1.bf16.msra.mxu1 %v1148_v52 }
  0x69   :  { %703 = vmatpush1.bf16.msra.mxu0 %v1139_v49  ;;  %667 = vmatprep.subr.bf16.mxu1 %v1149_v54  ;;  %v1183_v49 = vld [vmem:[#allocation6 + $0x50] sm:$0xff]  }
  0x6a   :  { %704 = vmatprep.subr.bf16.mxu0 %v1147_v51  ;;  %v1184_v54 = vld [vmem:[#allocation6 + $0x10] sm:$0xff]  }
  0x6c   :  { %668 = vmatpush1.bf16.msra.mxu1 %v1154_v56  ;;  %v1186_v56 = vld [vmem:[#allocation6 + $0x18] sm:$0xff]  }
  0x6d   :  { %705 = vmatpush1.bf16.msra.mxu0 %v1145_v53  ;;  %669 = vmatprep.subr.bf16.mxu1 %v1155_v58  ;;  %v1188_v58 = vld [vmem:[#allocation6 + $0x20] sm:$0xff]  }
  0x6e   :  { %706 = vmatprep.subr.bf16.mxu0 %v1153_v55  ;;  %v1185_v55 = vld [vmem:[#allocation6 + $0x58] sm:$0xff]  }
  0x70   :  { %670 = vmatpush1.bf16.msra.mxu1 %v1160_v61  ;;  %v1191_v61 = vld [vmem:[#allocation6 + $0x70] sm:$0xff]  }
  0x71   :  { %707 = vmatpush1.bf16.msra.mxu0 %v1151_v57  ;;  %671 = vmatprep.subr.bf16.mxu1 %v1161_v62  ;;  %v1187_v57 = vld [vmem:[#allocation6 + $0x60] sm:$0xff]   ;;  %v1192_v62 = vld [vmem:[#allocation6 + $0x30] sm:$0xff]  }
  0x72   :  { %708 = vmatprep.subr.bf16.mxu0 %v1159_v59  ;;  %v1189_v59 = vld [vmem:[#allocation6 + $0x68] sm:$0xff]  }
  0x74   :  { %672 = vmatpush1.bf16.msra.mxu1 %v1166_v1  ;;  %v311_v1 = vld [vmem:[%s1390_s4] sm:$0x3] }
  0x75   :  { %709 = vmatpush1.bf16.msra.mxu0 %v1157_v60  ;;  %673 = vmatprep.subr.bf16.mxu1 %v1167_v2  ;;  %v1190_v60 = vld [vmem:[#allocation6 + $0x28] sm:$0xff]  }
  0x76   :  { %710 = vmatprep.subr.bf16.mxu0 %v1165_v63  ;;  %v1193_v63 = vld [vmem:[#allocation6 + $0x78] sm:$0xff]  }
  0x78   :  { %674 = vmatpush1.bf16.msra.mxu1 %v1172_v5  ;;  %v316_v5 = vrot.slane %v311_v1, %v82_v13 }
  0x79   :  { %711 = vmatpush1.bf16.msra.mxu0 %v1163_v0  ;;  %1030 = vmatprep.subr.bf16.mxu1 %v1179_v10  ;;  %v1194_v0 = vld [vmem:[#allocation6 + $0x38] sm:$0xff]  }
  0x7a   :  { %712 = vmatprep.subr.bf16.mxu0 %v1171_v3 }
  0x7d   :  { %713 = vmatpush1.bf16.msra.mxu0 %v1169_v4 }
  0x7e   :  { %714 = vmatprep.subr.bf16.mxu0 %v1175_v6 }
  0x81   :  { %715 = vmatpush1.bf16.msra.mxu0 %v1173_v7  ;;  %v320_v7 = vrot.slane %v311_v1, %v86_v15  ;;  %v1004_v15 = vld [vmem:[%s1392_s6] ss:$0 sm:$0xff] }
  0x82   :  { %716 = vmatprep.subr.bf16.mxu0 %v1178_v8 }
  0x85   :  { %717 = vmatpush1.bf16.msra.mxu0 %v1176_v9 }
 0x113   :  { %v183_v18 = vpop.f32.mrb[0].mxu0 }
 0x114   :  { %v184_v19 = vadd.f32 %v183_v18, %v83_v16  ;;  %v185_v20 = vpop.f32.mrb[1].mxu0 }
 0x115   :  { %v186_v22 = vadd.f32 %v185_v20, %v87_v17  ;;  %v187_v23 = vpop.f32.mrb[2].mxu0 }
 0x116   :  { %v188_v25 = vadd.f32 %v187_v23, %v83_v16  ;;  %v189_v26 = vpop.f32.mrb[3].mxu0  ;;  %v235_v28 = vmax.f32 %v184_v19, 0.0 }
 0x117   :  { %v190_v27 = vadd.f32 %v189_v26, %v87_v17  ;;  %v236_v31 = vmax.f32 %v186_v22, 0.0 }
 0x118   :  { %v239_v29 = vmax.f32 %v188_v25, 0.0 }
 0x119   :  { %v240_v32 = vmax.f32 %v190_v27, 0.0 }
 0x11a   :  { %v243_v34 = vpack.c.bf16 %v239_v29, %v235_v28 }
 0x11b   :  { %v226_v35 = vpop.f32.mrb[4].mxu0  ;;  %v244_v36 = vpack.c.bf16 %v240_v32, %v236_v31 }
 0x11c   :  { %v227_v38 = vadd.f32 %v226_v35, %v91_v30  ;;  %v228_v39 = vpop.f32.mrb[5].mxu0 }
 0x11d   :  { %v229_v41 = vadd.f32 %v228_v39, %v95_v33  ;;  %v230_v42 = vpop.f32.mrb[6].mxu0  ;;  %675 = vmatprep.mubr.bf16.mxu1 %v244_v36 }
 0x11e   :  { %v231_v43 = vadd.f32 %v230_v42, %v91_v30  ;;  %v232_v44 = vpop.f32.mrb[7].mxu0  ;;  %676 = vmatmul.mubr.bf16.vlgmr.msra.gmra.mrb[0].mxu1 %v243_v34  ;;  %v237_v47 = vmax.f32 %v227_v38, 0.0 }
 0x11f   :  { %v233_v45 = vadd.f32 %v232_v44, %v95_v33  ;;  %1031 = vmatpush3.bf16.msra.mxu1 %v1180_v37  ;;  %v238_v50 = vmax.f32 %v229_v41, 0.0 }
 0x120   :  { %v241_v48 = vmax.f32 %v231_v43, 0.0  ;;  %1032 = vmatprep.subr.bf16.mxu1 %v1181_v40 }
 0x121   :  { %v242_v51 = vmax.f32 %v233_v45, 0.0 }
 0x122   :  { %v245_v52 = vpack.c.bf16 %v241_v48, %v237_v47 }
 0x123   :  { %v246_v53 = vpack.c.bf16 %v242_v51, %v238_v50  ;;  %1033 = vmatpush3.bf16.msra.mxu1 %v1182_v46 }
 0x124   :  { %1034 = vmatprep.subr.bf16.mxu1 %v1183_v49 }
 0x125   :  { %718 = vmatprep.mubr.bf16.mxu0 %v246_v53 }
 0x126   :  { %719 = vmatmul.mubr.bf16.vlgmr.msra.gmra.mrb[8].mxu0 %v245_v52 }
 0x127   :  { %1035 = vmatpush3.bf16.msra.mxu1 %v1184_v54 }
 0x128   :  { %1036 = vmatprep.subr.bf16.mxu1 %v1185_v55 }
 0x12b   :  { %1037 = vmatpush3.bf16.msra.mxu1 %v1186_v56 }
 0x12c   :  { %1038 = vmatprep.subr.bf16.mxu1 %v1187_v57 }
 0x12f   :  { %1039 = vmatpush3.bf16.msra.mxu1 %v1188_v58 }
 0x130   :  { %1040 = vmatprep.subr.bf16.mxu1 %v1189_v59 }
 0x133   :  { %1041 = vmatpush3.bf16.msra.mxu1 %v1190_v60 }
 0x134   :  { %1042 = vmatprep.subr.bf16.mxu1 %v1191_v61 }
 0x137   :  { %1043 = vmatpush3.bf16.msra.mxu1 %v1192_v62 }
 0x138   :  { %1044 = vmatprep.subr.bf16.mxu1 %v1193_v63 }
 0x13b   :  { %1045 = vmatpush3.bf16.msra.mxu1 %v1194_v0 }
 0x1f1   :  { %v677_v2 = vpop.f32.mrb[0].mxu1 }
 0x1f2   :  { %v679_v3 = vpop.f32.mrb[1].mxu1  ;;  %v678_v8 = vadd.f32 %v677_v2, %v316_v5 }
 0x1f3   :  { %v681_v4 = vpop.f32.mrb[2].mxu1  ;;  %v680_v9 = vadd.f32 %v679_v3, %v320_v7 }
 0x1f4   :  { %v683_v6 = vpop.f32.mrb[3].mxu1  ;;  %v682_v11 = vadd.f32 %v681_v4, %v316_v5 }
 0x1f5   :  { %v684_v17 = vadd.f32 %v683_v6, %v320_v7 }
 0x1f9   :  { %v720_v10 = vpop.f32.mrb[8].mxu0 }
 0x1fa   :  { %v721_v14 = vadd.f32 %v720_v10, %v678_v8  ;;  %v722_v16 = vpop.f32.mrb[9].mxu0 }
 0x1fb   :  { %v723_v18 = vadd.f32 %v722_v16, %v680_v9  ;;  %v724_v19 = vpop.f32.mrb[10].mxu0 }
 0x1fc   :  { %v725_v20 = vadd.f32 %v724_v19, %v682_v11  ;;  %v726_v21 = vpop.f32.mrb[11].mxu0  ;;  %v729_v23 = vmax.f32 %v721_v14, 0.0 }
 0x1fd   :  { %v727_v22 = vadd.f32 %v726_v21, %v684_v17  ;;  %v730_v25 = vmax.f32 %v723_v18, 0.0 }
 0x1fe   :  { %v731_v24 = vmax.f32 %v725_v20, 0.0 }
 0x1ff   :  { %v732_v13 = vmax.f32 %v727_v22, 0.0 }
 0x200   :  { %v733_v26 = vpack.c.bf16 %v731_v24, %v729_v23 }
 0x201   :  { %v734_v27 = vpack.c.bf16 %v732_v13, %v730_v25 }
 0x203   :  { %902 = vmatprep.mubr.bf16.mxu1 %v734_v27 }
 0x204   :  { %903 = vmatmul.mubr.bf16.vlgmr.msra.gmra.mrb[4].mxu1 %v733_v26 }
 0x2d7   :  { %v1046_v12 = vpop.f32.mrb[4].mxu1 }
 0x2d8   :  { %v1047_v28 = vpop.f32.mrb[5].mxu1 }
 0x2d9   :  { %v1048_v29 = vadd.f32 %v1047_v28, %v1046_v12  ;;  %v1049_v30 = vpop.f32.mrb[6].mxu1 }
 0x2da   :  { %v1050_v31 = vpop.f32.mrb[7].mxu1 }
 0x2db   :  { %v905_v32 = vadd.f32 %v1048_v29, %v1004_v15  ;;  %v1051_v33 = vadd.f32 %v1050_v31, %v1049_v30 }
 0x2dd   :  { %v908_v34 = vadd.f32 %v1051_v33, %v1004_v15  ;;  %1195 = vtanh.f32 %v905_v32 }
 0x2df   :  { %1197 = vtanh.f32 %v908_v34 }
 0x2e7   :  { %v1196_v35 = vpop.eup %1195 }
 0x2e9   :  { %v1198_v36 = vpop.eup %1197 }
 0x2ea   :  { %v1028_v37 = vpack.c.bf16 %v1198_v36, %v1196_v35 }
 0x2ec   :  { %1029 = vst [vmem:[%s1393_s7] sm:$0xff] %v1028_v37  }
 0x2ed   :  { %927 = vsyncpa [#allocation3], 1 }
 0x2ee   :  { %928 = vsyncpa [#allocation5], 1 }

</bundles_post_ra>
